<compile_context>
chip_gen: v7x
topology: tpu7x:2x2x1
jax: 0.10.0
libtpu: 0.0.40
codegen_flags: <defaults>
</compile_context>

<pallas_src>
from functools import partial

import jax
import jax.numpy as jnp
from jax.experimental import pallas as pl
from jax.experimental.pallas import tpu as pltpu


def _attention_kernel(enc_ref, h2_ref, w1t_ref, vrow_ref, ctx_ref, attn_ref, *,
                      seq_len):
    # enc_ref:  (TB*S, H)  encoder outputs for TB batch rows, flattened over S
    # h2_ref:   (TB, H)    precomputed dec_h @ W2^T + b1 + b2   (f32)
    # w1t_ref:  (H, H)     W1^T (so y = x @ W1^T)
    # vrow_ref: (1, H)     V weight as a row vector             (f32)
    # ctx_ref:  (TB, H)
    # attn_ref: (TB, S)    lane-dense attention weights
    rows, h = enc_ref.shape
    s = seq_len
    tb = rows // s

    enc2d = enc_ref[...]                                     # (TB*S, H), compute dtype

    # One MXU matmul with M = TB*S rows; f32 accumulation.
    h1 = jnp.dot(enc2d, w1t_ref[...],
                 preferred_element_type=jnp.float32)          # (TB*S, H) f32

    # Add the hoisted decoder projection (broadcast over S) and tanh (EUP).
    # Reshape is on the fresh f32 intermediate (S is a multiple of 8).
    t = jnp.tanh(h1.reshape(tb, s, h) + h2_ref[...][:, None, :])   # (TB, S, H) f32

    # Score via VPU multiply + lane reduction (keeps the N=1 path off the MXU).
    # V's bias is omitted: softmax(score + c) == softmax(score).
    score = jnp.sum(t * vrow_ref[...][None, :, :], axis=-1)   # (TB, S) lane-major

    # Softmax over the sequence axis (= lane axis of (TB, S)).
    # Exact divide: attn is a returned output (no approx reciprocal here).
    m = jnp.max(score, axis=-1, keepdims=True)                # (TB, 1)
    e = jnp.exp(score - m)                                    # (TB, S)
    attn = e / jnp.sum(e, axis=-1, keepdims=True)             # (TB, S) f32

    # Context.
    if h >= 128:
        # Big-H regime: per-row contraction attn(1,S) @ enc(S,H) on the MXU.
        enc3 = enc2d.reshape(tb, s, h)
        ctx = jnp.einsum('bqs,bsh->bqh', attn[:, None, :].astype(enc3.dtype),
                         enc3, preferred_element_type=jnp.float32)[:, 0, :]
    else:
        # Small-H regime: broadcast-multiply (VPU) + sublane sum over S (XLU);
        # the MXU would only use 1 of its rows per push here.
        enc3_f32 = enc2d.astype(jnp.float32).reshape(tb, s, h)
        ctx = jnp.sum(attn[:, :, None] * enc3_f32, axis=1)    # (TB, H) f32

    ctx_ref[...] = ctx.astype(ctx_ref.dtype)
    attn_ref[...] = attn.astype(attn_ref.dtype)


def _pick_vmem_limit():
    """Generation-aware scoped-VMEM limit with headroom for compiler scratch."""
    cap = 64 * 1024 * 1024                       # conservative default (v7x per-TC)
    try:
        info = pltpu.get_tpu_info()
        for attr in ("vmem_capacity_bytes", "vmem_bytes", "vmem_size_bytes"):
            v = getattr(info, attr, None)
            if v:
                cap = int(v)
                break
    except Exception:
        pass
    # ~48 MiB on v7x (64 MiB physical), ~96 MiB on v5e/v6e (128 MiB physical).
    return int(min(cap * 3 // 4, 100 * 1024 * 1024))


def _choose_batch_block(B, S, H, itemsize, vmem_budget):
    """VMEM-budget-derived batch tile, a multiple of 8 (or the full batch).

    Per batch row the kernel needs roughly:
      enc tile (double-buffered): 2 * S*H*itemsize
      f32 h1 / t / weighted slabs: ~3 * S*H*4
    plus small (TB,H)/(TB,S) tiles.
    """
    per_row = S * H * (2 * itemsize + 12) + 8 * H + 8 * S
    tb = max(1, int(vmem_budget) // max(1, per_row))
    if tb >= B:
        return B                                  # whole batch fits -> single step
    tb = max(8, (tb // 8) * 8)                    # (8,128) sublane rule
    while tb > 8 and B % tb:
        tb -= 8
    if B % tb:
        return B                                  # can't split cleanly; fall back
    return tb


def attention_forward(enc_outputs, dec_hidden, params, *, batch_block=None,
                      compute_dtype=jnp.float32):
    """enc_outputs: [B, S, H] f32; dec_hidden: [L, B, H] f32 or tuple (h, c)."""
    # Glue: pick last layer of the decoder hidden state (matches module logic).
    if isinstance(dec_hidden, tuple):
        dec_h = dec_hidden[0][-1]                 # [B, H]
    else:
        dec_h = dec_hidden[-1]                    # [B, H]

    B, S, H = enc_outputs.shape
    w1, b1, w2, b2, v_w, v_b = params
    del v_b   # softmax(score + c) == softmax(score): V's bias cannot affect outputs.

    f32 = jnp.float32
    # Hoisted decoder projection: one [B,H]@[H,H] matmul in plain XLA, in full
    # f32 precision so it matches the kernel's f32 MXU path; b1 folded in.
    h2 = jnp.dot(dec_h.astype(f32), jnp.transpose(w2).astype(f32),
                 precision=jax.lax.Precision.HIGHEST) + (b1 + b2).astype(f32)   # [B,H]

    # enc flattened to (B*S, H) (free reshape, row-major contiguous); enc and
    # W1^T optionally cast to bf16 for the big MXU matmul.
    enc2d = enc_outputs.reshape(B * S, H).astype(compute_dtype)
    w1t = jnp.transpose(w1).astype(compute_dtype)                # (H, H)
    v_row = v_w.reshape(1, H).astype(f32)                        # (1, H)

    vmem_limit = _pick_vmem_limit()
    if batch_block is None:
        batch_block = _choose_batch_block(
            B, S, H, jnp.dtype(compute_dtype).itemsize, vmem_budget=vmem_limit // 2)
    assert B % batch_block == 0, "batch_block must divide B"
    assert batch_block == B or batch_block % 8 == 0, "(8,128) sublane rule"
    nb = B // batch_block

    out_shapes = (
        jax.ShapeDtypeStruct((B, H), f32),        # context
        jax.ShapeDtypeStruct((B, S), f32),        # attn weights (lane-dense)
    )

    grid_spec = pltpu.PrefetchScalarGridSpec(
        num_scalar_prefetch=0,
        grid=(nb,),
        in_specs=[
            pl.BlockSpec((batch_block * S, H), lambda b: (b, 0)),   # enc (flattened)
            pl.BlockSpec((batch_block, H), lambda b: (b, 0)),       # h2 (hoisted)
            pl.BlockSpec((H, H), lambda b: (0, 0)),                 # W1^T
            pl.BlockSpec((1, H), lambda b: (0, 0)),                 # V row
        ],
        out_specs=[
            pl.BlockSpec((batch_block, H), lambda b: (b, 0)),
            pl.BlockSpec((batch_block, S), lambda b: (b, 0)),
        ],
    )

    context, attn2d = pl.pallas_call(
        partial(_attention_kernel, seq_len=S),
        out_shape=out_shapes,
        grid_spec=grid_spec,
        compiler_params=pltpu.CompilerParams(
            dimension_semantics=("parallel",),
            vmem_limit_bytes=vmem_limit),
    )(enc2d, h2, w1t, v_row)

    # Restore the PyTorch [B, S, 1] attention-weights shape in the wrapper.
    return context, attn2d[:, :, None]


def init_params(key, hidden_size):
    """Deterministic synthetic init for W1, W2, V (Linear layers)."""
    ks = jax.random.split(key, 6)
    scale = 1.0 / jnp.sqrt(hidden_size)
    w1 = jax.random.uniform(ks[0], (hidden_size, hidden_size), jnp.float32, -scale, scale)
    b1 = jax.random.uniform(ks[1], (hidden_size,), jnp.float32, -scale, scale)
    w2 = jax.random.uniform(ks[2], (hidden_size, hidden_size), jnp.float32, -scale, scale)
    b2 = jax.random.uniform(ks[3], (hidden_size,), jnp.float32, -scale, scale)
    v_w = jax.random.uniform(ks[4], (1, hidden_size), jnp.float32, -scale, scale)
    v_b = jax.random.uniform(ks[5], (1,), jnp.float32, -scale, scale)
    return (w1, b1, w2, b2, v_w, v_b)


def _reference_forward(enc_outputs, dec_hidden, params):
    """Pure-JAX reference mirroring the PyTorch module (full f32 matmuls)."""
    if isinstance(dec_hidden, tuple):
        dec_h = dec_hidden[0][-1]
    else:
        dec_h = dec_hidden[-1]
    w1, b1, w2, b2, v_w, v_b = params
    hi = jax.lax.Precision.HIGHEST
    dec_h = dec_h[:, None, :]                                     # [B, 1, H]
    s1 = jnp.dot(enc_outputs, w1.T, precision=hi) + b1            # [B, S, H]
    s2 = jnp.dot(dec_h, w2.T, precision=hi) + b2                  # [B, 1, H]
    score = jnp.dot(jnp.tanh(s1 + s2), v_w.T, precision=hi) + v_b # [B, S, 1]
    attn = jax.nn.softmax(score, axis=1)                          # [B, S, 1]
    ctx = (attn * enc_outputs).sum(axis=1)                        # [B, H]
    return ctx, attn


if __name__ == "__main__":
    # Pin matmul precision so wrapper / kernel / reference all use true-f32
    # dots (also covers interpret-mode execution of the in-kernel dot).
    jax.config.update("jax_default_matmul_precision", "highest")

    B, S, H, L = 4, 8, 32, 1   # batch, seq, hidden, num_layers

    key = jax.random.PRNGKey(0)
    k_enc, k_dec, k_par = jax.random.split(key, 3)

    enc_outputs = jax.random.normal(k_enc, (B, S, H), jnp.float32)
    dec_hidden = jax.random.normal(k_dec, (L, B, H), jnp.float32)
    params = init_params(k_par, H)

    ref_ctx, ref_attn = _reference_forward(enc_outputs, dec_hidden, params)

    # f32 path (default): exact-divide softmax + precision-matched matmuls.
    context, attn_weights = attention_forward(enc_outputs, dec_hidden, params)
    context = jax.block_until_ready(context)
    attn_weights = jax.block_until_ready(attn_weights)

    assert context.shape == (B, H) and attn_weights.shape == (B, S, 1)
    assert jnp.allclose(context, ref_ctx, atol=1e-3, rtol=1e-3), \
        float(jnp.max(jnp.abs(context - ref_ctx)))
    assert jnp.allclose(attn_weights, ref_attn, atol=1e-3, rtol=1e-3), \
        float(jnp.max(jnp.abs(attn_weights - ref_attn)))

    # bf16 MXU path (perf option: halves HBM/VMEM of the big operand).
    ctx_bf, attn_bf = attention_forward(enc_outputs, dec_hidden, params,
                                        compute_dtype=jnp.bfloat16)
    ctx_bf = jax.block_until_ready(ctx_bf)
    assert jnp.allclose(ctx_bf, ref_ctx, atol=5e-2, rtol=5e-2)
    assert jnp.allclose(attn_bf, ref_attn, atol=5e-2, rtol=5e-2)

    print("KERNEL_OK")
</pallas_src>

<mosaic_0001>
module attributes {stable_mosaic.version = 11 : i64} {
  func.func @_attention_kernel(%arg0: i32, %arg1: memref<32x32xf32, #tpu.memory_space<vmem>>, %arg2: memref<4x32xf32, #tpu.memory_space<vmem>>, %arg3: memref<32x32xf32, #tpu.memory_space<vmem>>, %arg4: memref<1x32xf32, #tpu.memory_space<vmem>>, %arg5: memref<4x32xf32, #tpu.memory_space<vmem>>, %arg6: memref<4x8xf32, #tpu.memory_space<vmem>>) attributes {dimension_semantics = [#tpu.dimension_semantics<parallel>], iteration_bounds = array<i64: 1>, scalar_prefetch = 0 : i64, scratch_operands = 0 : i64, tpu.core_type = #tpu.core_type<tc>, window_params = [{transform_indices = @transform_0, window_bounds = array<i64: 32, 32>}, {transform_indices = @transform_1, window_bounds = array<i64: 4, 32>}, {pipeline_mode = #tpu.pipeline_mode<synchronous>, transform_indices = @transform_2, window_bounds = array<i64: 32, 32>}, {pipeline_mode = #tpu.pipeline_mode<synchronous>, transform_indices = @transform_3, window_bounds = array<i64: 1, 32>}, {transform_indices = @transform_4, window_bounds = array<i64: 4, 32>}, {transform_indices = @transform_5, window_bounds = array<i64: 4, 8>}]} {
    %c0 = arith.constant 0 : index
    %c0_0 = arith.constant 0 : index
    %0 = vector.load %arg1[%c0, %c0_0] : memref<32x32xf32, #tpu.memory_space<vmem>>, vector<32x32xf32>
    %c0_1 = arith.constant 0 : index
    %c0_2 = arith.constant 0 : index
    %1 = vector.load %arg3[%c0_1, %c0_2] : memref<32x32xf32, #tpu.memory_space<vmem>>, vector<32x32xf32>
    %cst = arith.constant dense<0.000000e+00> : vector<32x32xf32>
    %2 = tpu.matmul %0, %1, %cst {dimension_numbers = #tpu.dot_dimension_numbers<[1], [0], [0], [1], [0, 0, 1, 1], [], []>, precision = #tpu.contract_precision<fp32>} : vector<32x32xf32>, vector<32x32xf32>, vector<32x32xf32> -> vector<32x32xf32>
    %3 = vector.shape_cast %2 : vector<32x32xf32> to vector<4x8x32xf32>
    %c0_3 = arith.constant 0 : index
    %c0_4 = arith.constant 0 : index
    %4 = vector.load %arg2[%c0_3, %c0_4] : memref<4x32xf32, #tpu.memory_space<vmem>>, vector<4x32xf32>
    %5 = vector.shape_cast %4 : vector<4x32xf32> to vector<4x1x32xf32>
    %6 = vector.broadcast %5 : vector<4x1x32xf32> to vector<4x8x32xf32>
    %7 = arith.addf %3, %6 : vector<4x8x32xf32>
    %8 = math.tanh %7 : vector<4x8x32xf32>
    %c0_5 = arith.constant 0 : index
    %c0_6 = arith.constant 0 : index
    %9 = vector.load %arg4[%c0_5, %c0_6] : memref<1x32xf32, #tpu.memory_space<vmem>>, vector<1x32xf32>
    %10 = vector.shape_cast %9 : vector<1x32xf32> to vector<1x1x32xf32>
    %11 = vector.broadcast %10 : vector<1x1x32xf32> to vector<4x8x32xf32>
    %12 = arith.mulf %8, %11 : vector<4x8x32xf32>
    %cst_7 = arith.constant dense<0.000000e+00> : vector<4x8xf32>
    %13 = vector.multi_reduction <add>, %12, %cst_7 [2] : vector<4x8x32xf32> to vector<4x8xf32>
    %cst_8 = arith.constant dense<0xFF800000> : vector<4xf32>
    %14 = vector.multi_reduction <maximumf>, %13, %cst_8 [1] : vector<4x8xf32> to vector<4xf32>
    %15 = vector.shape_cast %14 : vector<4xf32> to vector<4x1xf32>
    %16 = vector.broadcast %15 : vector<4x1xf32> to vector<4x8xf32>
    %17 = arith.subf %13, %16 : vector<4x8xf32>
    %18 = math.exp %17 : vector<4x8xf32>
    %cst_9 = arith.constant dense<0.000000e+00> : vector<4xf32>
    %19 = vector.multi_reduction <add>, %18, %cst_9 [1] : vector<4x8xf32> to vector<4xf32>
    %20 = vector.shape_cast %19 : vector<4xf32> to vector<4x1xf32>
    %21 = vector.broadcast %20 : vector<4x1xf32> to vector<4x8xf32>
    %22 = arith.divf %18, %21 : vector<4x8xf32>
    %23 = vector.shape_cast %0 : vector<32x32xf32> to vector<4x8x32xf32>
    %24 = vector.shape_cast %22 : vector<4x8xf32> to vector<4x8x1xf32>
    %25 = vector.broadcast %24 : vector<4x8x1xf32> to vector<4x8x32xf32>
    %26 = arith.mulf %25, %23 : vector<4x8x32xf32>
    %cst_10 = arith.constant dense<0.000000e+00> : vector<4x32xf32>
    %27 = vector.multi_reduction <add>, %26, %cst_10 [1] : vector<4x8x32xf32> to vector<4x32xf32>
    %c0_11 = arith.constant 0 : index
    %c0_12 = arith.constant 0 : index
    %28 = vector.load %arg5[%c0_11, %c0_12] : memref<4x32xf32, #tpu.memory_space<vmem>>, vector<4x32xf32>
    tpu.vector_store %arg5[%c0_11, %c0_12], %27 {strides = array<i32>} : memref<4x32xf32, #tpu.memory_space<vmem>>, vector<4x32xf32>,
    %c0_13 = arith.constant 0 : index
    %c0_14 = arith.constant 0 : index
    %29 = vector.load %arg6[%c0_13, %c0_14] : memref<4x8xf32, #tpu.memory_space<vmem>>, vector<4x8xf32>
    tpu.vector_store %arg6[%c0_13, %c0_14], %22 {strides = array<i32>} : memref<4x8xf32, #tpu.memory_space<vmem>>, vector<4x8xf32>,
    return
  }
  func.func @transform_0(%arg0: i32) -> (i32, i32) {
    %c0_i32 = arith.constant 0 : i32
    %c0_i32_0 = arith.constant 0 : i32
    return %arg0, %c0_i32 : i32, i32
  }
  func.func @transform_1(%arg0: i32) -> (i32, i32) {
    %c0_i32 = arith.constant 0 : i32
    %c0_i32_0 = arith.constant 0 : i32
    return %arg0, %c0_i32 : i32, i32
  }
  func.func @transform_2(%arg0: i32) -> (i32, i32) {
    %c0_i32 = arith.constant 0 : i32
    %c0_i32_0 = arith.constant 0 : i32
    %c0_i32_1 = arith.constant 0 : i32
    return %c0_i32, %c0_i32_0 : i32, i32
  }
  func.func @transform_3(%arg0: i32) -> (i32, i32) {
    %c0_i32 = arith.constant 0 : i32
    %c0_i32_0 = arith.constant 0 : i32
    %c0_i32_1 = arith.constant 0 : i32
    return %c0_i32, %c0_i32_0 : i32, i32
  }
  func.func @transform_4(%arg0: i32) -> (i32, i32) {
    %c0_i32 = arith.constant 0 : i32
    %c0_i32_0 = arith.constant 0 : i32
    return %arg0, %c0_i32 : i32, i32
  }
  func.func @transform_5(%arg0: i32) -> (i32, i32) {
    %c0_i32 = arith.constant 0 : i32
    %c0_i32_0 = arith.constant 0 : i32
    return %arg0, %c0_i32 : i32, i32
  }
}

</mosaic_0001>

<bundles_post_ra>
// kernel: tpu_custom_call.1
= control target key start
LH: loop header
LB: loop body
LE: loop exit
PB: predicated region body
PF: predicated region fallthrough
CT: control target
= control target key end

     0   :  { %11 = vsyncpa [#allocation3], 0  ;;  %s1616_s0 = inlined_call_operand.hbm [shape: f32[32,32], index: 0, kind: input, shape index: {}]   ;;  %s1617_s1 = inlined_call_operand.hbm [shape: f32[4,32], index: 1, kind: input, shape index: {}]   ;;  %s1618_s2 = inlined_call_operand.hbm [shape: f32[32,32], index: 2, kind: input, shape index: {}]   ;;  %s1619_s3 = inlined_call_operand.vmem [shape: f32[1,32], index: 3, kind: input, shape index: {}]   ;;  %s1620_s4 = inlined_call_operand.hbm [shape: f32[4,32], index: 4, kind: output, shape index: {0}]   ;;  %s1621_s5 = inlined_call_operand.hbm [shape: f32[4,8], index: 5, kind: output, shape index: {1}]  }
   0x1   :  { %12 = vsyncpa [#allocation6], 0 }
   0x2   :  { %13 = vsyncpa [#allocation4], 0 }
   0x3   :  { %14 = vsyncpa [#allocation10], 0  ;;  %s1374_s18 = smov [#allocation5]   ;;  %s1375_s20 = smov [#allocation2]  }
   0x4   :  { %s33_s19 = sshll.u32 %s1374_s18, 4  ;;  %s20_s21 = sshll.u32 %s1375_s20, 4  ;;  %s34_s19 = int_to_ptr.vmem [resolvable:$true] %s33_s19  ;;  %s1413_s21 = int_to_ptr.vmem [resolvable:$true] %s20_s21 }
   0x5   :  { %s1256_s24 = scalar_lea.hbm %s1617_s1, 64 }
   0x6   :  { %p1257_p0 = scmp.ne.s32.totalorder %s1617_s1, %s1256_s24  ;;  %p1260_p1 = scmp.lt.u32.totalorder %s1256_s24, %s1617_s1 }
   0x8   :  { %p1262_p2 = pnand %p1260_p1, %p1257_p0 }
   0xa   :  { %1265 = shalt.err (!%p1262_p2)
}
   0xb   :  { %s1266_s29 = scalar_lea.vmem %s34_s19, 64  ;;  %p1271_p4 = scmp.lt.s32.totalorder %s34_s19, %s34_s19 }
   0xc   :  { %p1267_p3 = scmp.ne.s32.totalorder %s34_s19, %s1266_s29  ;;  %p1272_p5 = scmp.lt.s32.totalorder %s1266_s29, %s1266_s29 }
   0xe   :  { %p1273_p6 = por %p1272_p5, %p1271_p4 }
  0x10   :  { %p1274_p7 = pnand %p1273_p6, %p1267_p3 }
  0x12   :  { %1277 = shalt.err (!%p1274_p7)
}
  0x13   :  { %36 = dma.hbm_to_vmem [thread:$0]  %s1617_s1, 64, %s34_s19, [#allocation6]  }
  0x14   :  { %s1278_s9 = scalar_lea.hbm %s1616_s0, 512 }
  0x15   :  { %p1279_p8 = scmp.ne.s32.totalorder %s1616_s0, %s1278_s9  ;;  %p1282_p9 = scmp.lt.u32.totalorder %s1278_s9, %s1616_s0 }
  0x17   :  { %p1284_p10 = pnand %p1282_p9, %p1279_p8 }
  0x19   :  { %1287 = shalt.err (!%p1284_p10)
}
  0x1a   :  { %s1288_s14 = scalar_lea.vmem %s1413_s21, 512  ;;  %p1293_p12 = scmp.lt.s32.totalorder %s1413_s21, %s1413_s21 }
  0x1b   :  { %p1289_p11 = scmp.ne.s32.totalorder %s1413_s21, %s1288_s14  ;;  %p1294_p13 = scmp.lt.s32.totalorder %s1288_s14, %s1288_s14 }
  0x1d   :  { %p1295_p0 = por %p1294_p13, %p1293_p12 }
  0x1f   :  { %p1296_p1 = pnand %p1295_p0, %p1289_p11 }
  0x21   :  { %1299 = shalt.err (!%p1296_p1)
}
  0x22   :  { %s1376_s1 = smov 128   ;;  %s1377_s15 = smov 8  }
  0x23   :  { %26 = dma.hbm_to_vmem [thread:$0]  %s1616_s0, 512, %s1413_s21, [#allocation3], %s1376_s1, %s1376_s1, %s1377_s15  }
  0x24   :  { %s1378_s18 = smov [#allocation7]   ;;  %s1300_s23 = scalar_lea.hbm %s1618_s2, 512 }
  0x25   :  { %s42_s19 = sshll.u32 %s1378_s18, 4  ;;  %p1301_p2 = scmp.ne.s32.totalorder %s1618_s2, %s1300_s23  ;;  %s43_s19 = int_to_ptr.vmem [resolvable:$true] %s42_s19 }
  0x26   :  { %p1304_p3 = scmp.lt.u32.totalorder %s1300_s23, %s1618_s2 }
  0x28   :  { %p1306_p4 = pnand %p1304_p3, %p1301_p2 }
  0x2a   :  { %1309 = shalt.err (!%p1306_p4)
}
  0x2b   :  { %s1310_s28 = scalar_lea.vmem %s43_s19, 512  ;;  %p1315_p6 = scmp.lt.s32.totalorder %s43_s19, %s43_s19 }
  0x2c   :  { %p1311_p5 = scmp.ne.s32.totalorder %s43_s19, %s1310_s28  ;;  %p1316_p7 = scmp.lt.s32.totalorder %s1310_s28, %s1310_s28 }
  0x2e   :  { %p1317_p8 = por %p1316_p7, %p1315_p6 }
  0x30   :  { %p1318_p9 = pnand %p1317_p8, %p1311_p5 }
  0x32   :  { %1321 = shalt.err (!%p1318_p9)
}
  0x33   :  { %48 = dma.hbm_to_vmem [thread:$0]  %s1618_s2, 512, %s43_s19, [#allocation6], %s1376_s1, %s1376_s1, %s1377_s15  }
  0x34   :  { %1366 = dma.done.wait [#allocation3], 512  }
  0x35   :  { %1367 = vsyncadd [#allocation3], 4294966784 }
  0x36   :  { %1368 = dma.done.wait [#allocation6], 576  }
  0x37   :  { %1369 = vsyncadd [#allocation6], 4294966720  ;;  %vm68_vm0 = vcmask 261120   ;;  %v64_v0 = vld [vmem:[#allocation7] sm:$0xff]  ;;  %v65_v1 = vld [vmem:[#allocation7 + $0x8] sm:$0xff]  ;;  %v708_v62 = vlaneseq  ;;  %vm794_vm1 = vcmask 1041409  }
  0x38   :  { %v66_v2 = vld [vmem:[#allocation7 + $0x10] sm:$0xff]  ;;  %v82_v3 = vand.u32 4294901760, %v64_v0  ;;  %v85_v4 = vand.u32 4294901760, %v65_v1  ;;  %v67_v5 = vld [vmem:[#allocation7 + $0x18] sm:$0xff]  ;;  %v1458_v8 = vld [vmem:[#allocation2 + $0x8] sm:$0xff]  ;;  %vm796_vm2 = vcmask 1042434  }
  0x39   :  { %v88_v6 = vand.u32 4294901760, %v66_v2  ;;  %v1456_v7 = vld [vmem:[#allocation2] sm:$0xff]  ;;  %v91_v9 = vand.u32 4294901760, %v67_v5  ;;  %v73_v11 = vsel %vm68_vm0, %v1458_v8, 0  ;;  %v1464_v12 = vld [vmem:[#allocation2 + $0x10] sm:$0xff]  ;;  %v1466_v13 = vld [vmem:[#allocation2 + $0x18] sm:$0xff] }
  0x3a   :  { %v70_v10 = vsel %vm68_vm0, %v1456_v7, 0  ;;  %v1468_v14 = vpack.c.bf16 %v85_v4, %v82_v3  ;;  %v1472_v16 = vand.u32 4294901760, %v73_v11  ;;  %v192_v17 = vsub.f32 %v64_v0, %v82_v3 }
  0x3b   :  { %v1470_v15 = vand.u32 4294901760, %v70_v10  ;;  %v1474_v18 = vpack.c.bf16 %v91_v9, %v88_v6  ;;  %v199_v19 = vsub.f32 %v65_v1, %v85_v4  ;;  %v76_v20 = vsel %vm68_vm0, %v1464_v12, 0  ;;  %v1019_v1 = vld.sshfl [vmem:[#allocation5] sm:$0x33 pattern:$0x75316420] }
  0x3c   :  { %v79_v21 = vsel %vm68_vm0, %v1466_v13, 0  ;;  %1154 = vmatprep.subr.bf16.mxu1 %v1468_v14  ;;  %1178 = vmatprep.subr.bf16.mxu0 %v1468_v14  ;;  %v1486_v23 = vsub.f32 %v73_v11, %v1472_v16  ;;  %v193_v24 = vand.u32 4294901760, %v192_v17  ;;  %v1488_v25 = vand.u32 4294901760, %v76_v20 }
  0x3d   :  { %v1483_v22 = vsub.f32 %v70_v10, %v1470_v15  ;;  %1156 = vmatpush3.bf16.msra.mxu1 %v1468_v14  ;;  %1180 = vmatpush3.bf16.msra.mxu0 %v1468_v14  ;;  %v200_v26 = vand.u32 4294901760, %v199_v19  ;;  %v1492_v27 = vand.u32 4294901760, %v79_v21  ;;  %v206_v28 = vsub.f32 %v66_v2, %v88_v6 }
  0x3e   :  { %v213_v29 = vsub.f32 %v67_v5, %v91_v9  ;;  %1158 = vmatprep.subr.bf16.mxu1 %v1474_v18  ;;  %1182 = vmatprep.subr.bf16.mxu0 %v1474_v18  ;;  %v162_v31 = vand.u32 4294901760, %v1486_v23  ;;  %v194_v32 = vsub.f32 %v192_v17, %v193_v24  ;;  %v1499_v33 = vsub.f32 %v76_v20, %v1488_v25 }
  0x3f   :  { %v152_v30 = vand.u32 4294901760, %v1483_v22  ;;  %v201_v34 = vsub.f32 %v199_v19, %v200_v26  ;;  %v1185_v35 = vpack.c.bf16 %v200_v26, %v193_v24  ;;  %v1502_v36 = vsub.f32 %v79_v21, %v1492_v27 }
  0x40   :  { %v207_v37 = vand.u32 4294901760, %v206_v28  ;;  %v163_v39 = vsub.f32 %v1486_v23, %v162_v31  ;;  %v195_v40 = vand.u32 4294901760, %v194_v32  ;;  %v172_v41 = vand.u32 4294901760, %v1499_v33 }
  0x41   :  { %v153_v38 = vsub.f32 %v1483_v22, %v152_v30  ;;  %1119 = vmatprep.mubr.f32.mxu0 %v152_v30  ;;  %1160 = vmatpush3.bf16.msra.mxu1 %v1474_v18  ;;  %v202_v42 = vand.u32 4294901760, %v201_v34  ;;  %v182_v43 = vand.u32 4294901760, %v1502_v36  ;;  %v214_v45 = vand.u32 4294901760, %v213_v29 }
  0x42   :  { %1184 = vmatpush3.bf16.msra.mxu0 %v1474_v18  ;;  %v208_v44 = vsub.f32 %v206_v28, %v207_v37  ;;  %v164_v47 = vand.u32 4294901760, %v163_v39  ;;  %v173_v48 = vsub.f32 %v1499_v33, %v172_v41  ;;  %v1169_v58 = vpack.c.bf16 %v199_v19, %v192_v17 }
  0x43   :  { %v154_v46 = vand.u32 4294901760, %v153_v38  ;;  %1186 = vmatprep.subr.bf16.mxu0 %v1185_v35  ;;  %v1161_v49 = vpack.c.bf16 %v202_v42, %v195_v40  ;;  %v183_v50 = vsub.f32 %v1502_v36, %v182_v43  ;;  %v215_v52 = vsub.f32 %v213_v29, %v214_v45 }
  0x44   :  { %v209_v51 = vand.u32 4294901760, %v208_v44  ;;  %v174_v53 = vand.u32 4294901760, %v173_v48  ;;  %v1189_v54 = vpack.c.bf16 %v214_v45, %v207_v37  ;;  %v1173_v59 = vpack.c.bf16 %v213_v29, %v206_v28 }
  0x45   :  { %1077 = vmatprep.mubr.f32.mxu1 %v154_v46  ;;  %1120 = vmatmul.mubr.f32.vlgmr.msra.gmra.mrb[0].mxu0 %v162_v31  ;;  %v184_v55 = vand.u32 4294901760, %v183_v50  ;;  %v216_v56 = vand.u32 4294901760, %v215_v52  ;;  %v1379_v60 = vmov 1966171168   ;;  %v1532_v0 = vshrl.u32 %v708_v62, 7 }
  0x46   :  { %1078 = vmatmul.mubr.f32.vlgmr.msra.gmra.mrb[0].mxu1 %v164_v47  ;;  %1162 = vmatprep.subr.bf16.mxu1 %v1161_v49  ;;  %v706_v61 = vunpack.c.l.s4 %v1379_v60  ;;  %v704_v2 = vcombine.high %v1019_v1, %v1019_v1  ;;  %v777_v46 = vand.u32 127, %v708_v62  ;;  %vm798_vm3 = vcmask 1043459  }
  0x47   :  { %1164 = vmatpush3.bf16.msra.mxu1 %v1161_v49  ;;  %1188 = vmatpush3.bf16.msra.mxu0 %v1185_v35  ;;  %v1165_v57 = vpack.c.bf16 %v216_v56, %v209_v51  ;;  %v1536_v5 = vsub.s32 0, %v1532_v0  ;;  %vm801_vm4 = vcmask 60416   ;;  %v1380_v60 = vmov 0  }
  0x48   :  { %1080 = vmatprep.mubr.f32.mxu1 %v174_v53  ;;  %1122 = vmatprep.mubr.f32.mxu0 %v172_v41  ;;  %v707_v63 = vunpack.c.0.s8 %v706_v61  ;;  %v1550_v48 = vsub.s32 %v777_v46, %v1532_v0  ;;  %v812_v61 = vsub.s32 1, %v1532_v0  ;;  %v816_v62 = vsub.s32 2, %v1532_v0 }
  0x49   :  { %1123 = vmatmul.mubr.f32.gmra.mrb[2].mxu0 %v182_v43  ;;  %1190 = vmatprep.subr.bf16.mxu0 %v1189_v54 }
  0x4a   :  { %1081 = vmatmul.mubr.f32.gmra.mrb[2].mxu1 %v184_v55  ;;  %1166 = vmatprep.subr.bf16.mxu1 %v1165_v57  ;;  %v710_v3 = vsub.s32 %v707_v63, %v1532_v0  ;;  %v820_v63 = vsub.s32 3, %v1532_v0 }
  0x4b   :  { %1168 = vmatpush3.bf16.msra.mxu1 %v1165_v57  ;;  %1192 = vmatpush3.bf16.msra.mxu0 %v1189_v54 }
  0x4c   :  { %1091 = vmatprep.mubr.f32.mxu1 %v1470_v15  ;;  %1133 = vmatprep.mubr.f32.mxu0 %v1470_v15  ;;  %v718_v4 = vrot.slane %v704_v2, %v710_v3  ;;  %v711_v6 = vrot.slane %v1019_v1, %v710_v3 }
  0x4d   :  { %1170 = vmatprep.subr.bf16.mxu1 %v1169_v58  ;;  %1194 = vmatprep.subr.bf16.mxu0 %v1468_v14 }
  0x4e   :  { %1092 = vmatmul.mubr.f32.vlgmr.msra.gmra.mrb[0].mxu1 %v1472_v16  ;;  %1134 = vmatmul.mubr.f32.vlgmr.msra.gmra.mrb[0].mxu0 %v1472_v16  ;;  %v728_v9 = vrot.slane %v718_v4, %v1536_v5  ;;  %v720_v10 = vcombine.high %v718_v4, %v718_v4 }
  0x4f   :  { %1172 = vmatpush3.bf16.msra.mxu1 %v1169_v58  ;;  %1196 = vmatpush3.bf16.msra.mxu0 %v1468_v14 }
  0x50   :  { %1094 = vmatprep.mubr.f32.mxu1 %v1488_v25  ;;  %1136 = vmatprep.mubr.f32.mxu0 %v1488_v25 }
  0x51   :  { %1174 = vmatprep.subr.bf16.mxu1 %v1173_v59  ;;  %1198 = vmatprep.subr.bf16.mxu0 %v1474_v18 }
  0x52   :  { %1095 = vmatmul.mubr.f32.gmra.mrb[2].mxu1 %v1492_v27  ;;  %1137 = vmatmul.mubr.f32.gmra.mrb[2].mxu0 %v1492_v27 }
  0x53   :  { %1176 = vmatpush3.bf16.msra.mxu1 %v1173_v59  ;;  %1200 = vmatpush3.bf16.msra.mxu0 %v1474_v18 }
  0x54   :  { %1105 = vmatprep.mubr.f32.mxu1 %v1483_v22  ;;  %1147 = vmatprep.mubr.f32.mxu0 %v1470_v15  ;;  %v724_v15 = vrot.slane %v711_v6, %v1536_v5  ;;  %v736_v22 = vrot.slane %v720_v10, %v1536_v5 }
  0x55   :  { %1231 = vset.pattern.permute.xlu0 %v1380_v60  ;;  %1230 = vset.pattern.permute.xlu1 %v1380_v60 }
  0x56   :  { %1106 = vmatmul.mubr.f32.vlgmr.msra.gmra.mrb[0].mxu1 %v1486_v23  ;;  %1148 = vmatmul.mubr.f32.vlgmr.msra.gmra.mrb[0].mxu0 %v1472_v16  ;;  %v719_v16 = vcombine.high %v711_v6, %v711_v6 }
  0x57   :  { %1108 = vmatprep.mubr.f32.mxu1 %v1499_v33  ;;  %1150 = vmatprep.mubr.f32.mxu0 %v1488_v25  ;;  %v1020_v33 = vld [vmem:[%s1619_s3] ss:$0 sm:$0xff]  ;;  %s1381_s3 = smov [#allocation9]  }
  0x58   :  { %v732_v26 = vrot.slane %v719_v16, %v1536_v5  ;;  %s1005_s30 = sshll.u32 %s1381_s3, 4  ;;  %s1006_s30 = int_to_ptr.vmem [resolvable:$true] %s1005_s30 }
  0x59   :  { %s1322_s6 = scalar_lea.vmem %s1006_s30, 64  ;;  %p1327_p11 = scmp.lt.s32.totalorder %s1006_s30, %s1006_s30 }
  0x5a   :  { %1109 = vmatmul.mubr.f32.gmra.mrb[2].mxu1 %v1502_v36  ;;  %1151 = vmatmul.mubr.f32.gmra.mrb[2].mxu0 %v1492_v27  ;;  %p1323_p10 = scmp.ne.s32.totalorder %s1006_s30, %s1322_s6  ;;  %p1328_p12 = scmp.lt.s32.totalorder %s1322_s6, %s1322_s6 }
  0x5c   :  { %p1329_p13 = por %p1328_p12, %p1327_p11 }
  0x5e   :  { %p1330_p0 = pnand %p1329_p13, %p1323_p10 }
 0x129   :  { %v1107_v11 = vpop.f32.mrb[0].mxu1  ;;  %v1149_v14 = vpop.f32.mrb[0].mxu0 }
 0x12a   :  { %v1201_v17 = vadd.f32 %v1149_v14, %v1107_v11  ;;  %v375_v18 = vpop.f32.mrb[1].mxu1  ;;  %v673_v19 = vpop.f32.mrb[1].mxu0 }
 0x12b   :  { %v1202_v20 = vadd.f32 %v673_v19, %v375_v18 }
 0x12c   :  { %v742_v21 = vadd.f32 %v1201_v17, %v728_v9 }
 0x12d   :  { %v741_v23 = vadd.f32 %v1202_v20, %v724_v15  ;;  %v1110_v24 = vpop.f32.mrb[2].mxu1  ;;  %v1152_v25 = vpop.f32.mrb[2].mxu0 }
 0x12e   :  { %1232 = vtanh.f32 %v742_v21  ;;  %v1203_v27 = vadd.f32 %v1152_v25, %v1110_v24  ;;  %v389_v28 = vpop.f32.mrb[3].mxu1  ;;  %v685_v29 = vpop.f32.mrb[3].mxu0 }
 0x12f   :  { %1234 = vtanh.f32 %v741_v23  ;;  %v1204_v30 = vadd.f32 %v685_v29, %v389_v28 }
 0x130   :  { %v744_v31 = vadd.f32 %v1203_v27, %v736_v22 }
 0x131   :  { %v743_v32 = vadd.f32 %v1204_v30, %v732_v26 }
 0x132   :  { %1236 = vtanh.f32 %v744_v31 }
 0x133   :  { %1238 = vtanh.f32 %v743_v32 }
 0x138   :  { %v1233_v34 = vpop.eup %1232 }
 0x139   :  { %v1235_v35 = vpop.eup %1234  ;;  %v757_v39 = vmul.f32 %v1233_v34, %v1020_v33 }
 0x13a   :  { %v756_v36 = vmul.f32 %v1235_v35, %v1020_v33 }
 0x13b   :  { %v763_v42 = vsel %vm68_vm0, %v757_v39, 0.0 }
 0x13c   :  { %v1237_v37 = vpop.eup %1236  ;;  %v760_v38 = vsel %vm68_vm0, %v756_v36, 0.0 }
 0x13d   :  { %v1239_v40 = vpop.eup %1238  ;;  %761 = vadd.xlane.f32.xlu0 %v760_v38  ;;  %v759_v44 = vmul.f32 %v1237_v37, %v1020_v33 }
 0x13e   :  { %v758_v41 = vmul.f32 %v1239_v40, %v1020_v33 }
 0x13f   :  { %v769_v45 = vsel %vm68_vm0, %v759_v44, 0.0 }
 0x140   :  { %v766_v43 = vsel %vm68_vm0, %v758_v41, 0.0 }
 0x141   :  { %764 = vadd.xlane.f32.xlu0 %v763_v42  ;;  %767 = vadd.xlane.f32.xlu1 %v766_v43 }
 0x145   :  { %770 = vadd.xlane.f32.xlu1 %v769_v45 }
 0x1ca   :  { %v762_v47 = vpop.xlane.xlu0 %761 }
 0x1cb   :  { %v781_v51 = vrot.slane %v762_v47, %v1550_v48 }
 0x1ce   :  { %v765_v49 = vpop.xlane.xlu0 %764  ;;  %v768_v50 = vpop.xlane.xlu1 %767 }
 0x1cf   :  { %v785_v52 = vrot.slane %v765_v49, %v1550_v48  ;;  %v789_v53 = vrot.slane %v768_v50, %v1550_v48 }
 0x1d1   :  { %v795_v54 = vsel %vm794_vm1, %v785_v52, %v781_v51 }
 0x1d2   :  { %v771_v55 = vpop.xlane.xlu1 %770  ;;  %v797_v57 = vsel %vm796_vm2, %v789_v53, %v795_v54 }
 0x1d3   :  { %v793_v56 = vrot.slane %v771_v55, %v1550_v48 }
 0x1d5   :  { %v799_v58 = vsel %vm798_vm3, %v793_v56, %v797_v57 }
 0x1d6   :  { %v802_v59 = vsel %vm801_vm4, %v799_v58, -inf }
 0x1d7   :  { %803 = vmax.xlane.f32.xlu0 %v802_v59 }
 0x264   :  { %v804_v1 = vpop.xlane.xlu0 %803 }
 0x265   :  { %v809_v2 = vrot.slane %v804_v1, %v1536_v5  ;;  %v813_v3 = vrot.slane %v804_v1, %v812_v61  ;;  %v817_v4 = vrot.slane %v804_v1, %v816_v62  ;;  %v821_v6 = vrot.slane %v804_v1, %v820_v63 }
 0x267   :  { %v826_v9 = vsub.f32 %v762_v47, %v809_v2  ;;  %v827_v10 = vsub.f32 %v765_v49, %v813_v3  ;;  %v828_v11 = vsub.f32 %v768_v50, %v817_v4  ;;  %v829_v16 = vsub.f32 %v771_v55, %v821_v6 }
 0x269   :  { %v830_v14 = vmul.f32 1.442695, %v826_v9  ;;  %v832_v15 = vmul.f32 1.442695, %v827_v10  ;;  %v834_v17 = vmul.f32 1.442695, %v828_v11 }
 0x26a   :  { %v836_v18 = vmul.f32 1.442695, %v829_v16 }
 0x26b   :  { %1240 = vpow2.f32 %v830_v14 }
 0x26c   :  { %1242 = vpow2.f32 %v832_v15 }
 0x26d   :  { %1244 = vpow2.f32 %v834_v17 }
 0x26e   :  { %1246 = vpow2.f32 %v836_v18 }
 0x275   :  { %v1241_v19 = vpop.eup %1240 }
 0x276   :  { %v1243_v0 = vpop.eup %1242  ;;  %843 = vperm.xlu1 %1230, %v1241_v19  }
 0x277   :  { %846 = vperm.xlu0 %1231, %v1243_v0   ;;  %v1245_v20 = vpop.eup %1244 }
 0x278   :  { %v1247_v21 = vpop.eup %1246 }
 0x27a   :  { %849 = vperm.xlu1 %1230, %v1245_v20  }
 0x27e   :  { %852 = vperm.xlu1 %1230, %v1247_v21  }
 0x2f5   :  { %v844_v22 = vpop.permute.xlu1 %843 }
 0x2f6   :  { %v847_v23 = vpop.permute.xlu0 %846  ;;  %v857_v26 = vrot.slane %v844_v22, %v1550_v48 }
 0x2f7   :  { %v861_v25 = vrot.slane %v847_v23, %v1550_v48 }
 0x2f9   :  { %v850_v24 = vpop.permute.xlu1 %849  ;;  %v870_v29 = vsel %vm794_vm1, %v861_v25, %v857_v26 }
 0x2fa   :  { %v865_v27 = vrot.slane %v850_v24, %v1550_v48 }
 0x2fc   :  { %v871_v31 = vsel %vm796_vm2, %v865_v27, %v870_v29 }
 0x2fd   :  { %v853_v28 = vpop.permute.xlu1 %852 }
 0x2fe   :  { %v869_v30 = vrot.slane %v853_v28, %v1550_v48 }
 0x300   :  { %v872_v32 = vsel %vm798_vm3, %v869_v30, %v871_v31 }
 0x301   :  { %v874_v33 = vsel %vm801_vm4, %v872_v32, 0.0 }
 0x302   :  { %875 = vadd.xlane.f32.xlu1 %v874_v33 }
 0x38f   :  { %v876_v34 = vpop.xlane.xlu1 %875 }
 0x390   :  { %v881_v35 = vrot.slane %v876_v34, %v1536_v5  ;;  %v885_v36 = vrot.slane %v876_v34, %v812_v61  ;;  %v889_v37 = vrot.slane %v876_v34, %v816_v62  ;;  %v893_v38 = vrot.slane %v876_v34, %v820_v63 }
 0x392   :  { %1248 = vrcp.f32 %v881_v35 }
 0x393   :  { %1250 = vrcp.f32 %v885_v36 }
 0x394   :  { %1252 = vrcp.f32 %v889_v37 }
 0x395   :  { %1254 = vrcp.f32 %v893_v38 }
 0x39c   :  { %v1249_v39 = vpop.eup %1248 }
 0x39d   :  { %v899_v40 = vmul.f32 %v1249_v39, %v1241_v19  ;;  %v1251_v41 = vpop.eup %1250 }
 0x39e   :  { %v901_v42 = vmul.f32 %v1251_v41, %v1243_v0  ;;  %v1253_v43 = vpop.eup %1252 }
 0x39f   :  { %908 = vperm.xlu0 %1231, %v899_v40   ;;  %v903_v44 = vmul.f32 %v1253_v43, %v1245_v20  ;;  %v1255_v45 = vpop.eup %1254 }
 0x3a0   :  { %v905_v46 = vmul.f32 %v1255_v45, %v1247_v21 }
 0x3a3   :  { %913 = vperm.xlu0 %1231, %v901_v42  }
 0x3a7   :  { %918 = vperm.xlu0 %1231, %v903_v44  }
 0x3ab   :  { %923 = vperm.xlu0 %1231, %v905_v46  }
 0x41e   :  { %v909_v5 = vpop.permute.xlu0 %908 }
 0x41f   :  { %v926_v47 = vmul.f32 %v909_v5, %v1456_v7  ;;  %v971_v7 = vrot.slane %v909_v5, %v1550_v48 }
 0x421   :  { %v930_v49 = vsel %vm68_vm0, %v926_v47, 0.0 }
 0x422   :  { %v931_v50 = vrot.slane %v930_v49, 4  ;;  %v914_v51 = vpop.permute.xlu0 %913 }
 0x423   :  { %v927_v52 = vmul.f32 %v914_v51, %v1458_v8  ;;  %v975_v57 = vrot.slane %v914_v51, %v1550_v48 }
 0x424   :  { %v932_v54 = vadd.f32 %v931_v50, %v930_v49 }
 0x425   :  { %v937_v53 = vsel %vm68_vm0, %v927_v52, 0.0  ;;  %v984_v2 = vsel %vm794_vm1, %v975_v57, %v971_v7 }
 0x426   :  { %v938_v55 = vrot.slane %v937_v53, 4  ;;  %v919_v56 = vpop.permute.xlu0 %918  ;;  %v933_v62 = vrot.slane %v932_v54, 2 }
 0x427   :  { %v928_v58 = vmul.f32 %v919_v56, %v1464_v12  ;;  %v979_v60 = vrot.slane %v919_v56, %v1550_v48 }
 0x428   :  { %v939_v59 = vadd.f32 %v938_v55, %v937_v53  ;;  %v934_v14 = vadd.f32 %v933_v62, %v932_v54 }
 0x429   :  { %v944_v61 = vsel %vm68_vm0, %v928_v58, 0.0  ;;  %v985_v9 = vsel %vm796_vm2, %v979_v60, %v984_v2 }
 0x42a   :  { %v940_v8 = vrot.slane %v939_v59, 2  ;;  %v945_v63 = vrot.slane %v944_v61, 4  ;;  %v924_v1 = vpop.permute.xlu0 %923 }
 0x42b   :  { %v929_v3 = vmul.f32 %v924_v1, %v1466_v13  ;;  %v983_v4 = vrot.slane %v924_v1, %v1550_v48 }
 0x42c   :  { %v941_v12 = vadd.f32 %v940_v8, %v939_v59  ;;  %v946_v6 = vadd.f32 %v945_v63, %v944_v61 }
 0x42d   :  { %v951_v10 = vsel %vm68_vm0, %v929_v3, 0.0  ;;  %v986_v11 = vsel %vm798_vm3, %v983_v4, %v985_v9 }
 0x42e   :  { %v947_v15 = vrot.slane %v946_v6, 2  ;;  %v952_v16 = vrot.slane %v951_v10, 4  ;;  %988 = vst.msk [vmem:[#allocation9] sm:$0xf] %vm801_vm4, %v986_v11 }
 0x42f   :  { %1333 = shalt.err (!%p1330_p0)
}
 0x430   :  { %s1334_s9 = scalar_lea.hbm %s1621_s5, 64 }
 0x431   :  { %p1335_p1 = scmp.ne.s32.totalorder %s1621_s5, %s1334_s9  ;;  %p1338_p2 = scmp.lt.u32.totalorder %s1334_s9, %s1621_s5 }
 0x433   :  { %p1340_p3 = pnand %p1338_p2, %p1335_p1 }
 0x435   :  { %1343 = shalt.err (!%p1340_p3)
}
 0x436   :  { %1008 = dma.vmem_to_hbm [thread:$0]  %s1006_s30, 64, %s1621_s5, [#allocation10]   ;;  %v942_v13 = vrot.slane %v941_v12, 1  ;;  %v948_v48 = vadd.f32 %v947_v15, %v946_v6  ;;  %v953_v17 = vadd.f32 %v952_v16, %v951_v10  ;;  %v935_v18 = vrot.slane %v934_v14, 1 }
 0x437   :  { %s1382_s15 = smov [#allocation8]   ;;  %vm966_vm5 = vcmask 257024  }
 0x438   :  { %v949_v19 = vrot.slane %v948_v48, 1  ;;  %v954_v0 = vrot.slane %v953_v17, 2  ;;  %v943_v20 = vadd.f32 %v942_v13, %v941_v12  ;;  %v936_v23 = vadd.f32 %v935_v18, %v934_v14  ;;  %s995_s16 = sshll.u32 %s1382_s15, 4  ;;  %s996_s16 = int_to_ptr.vmem [resolvable:$true] %s995_s16 }
 0x439   :  { %s1344_s5 = scalar_lea.vmem %s996_s16, 64  ;;  %p1349_p5 = scmp.lt.s32.totalorder %s996_s16, %s996_s16 }
 0x43a   :  { %v955_v21 = vadd.f32 %v954_v0, %v953_v17  ;;  %v950_v22 = vadd.f32 %v949_v19, %v948_v48  ;;  %v962_v26 = vsel %vm794_vm1, %v943_v20, %v936_v23  ;;  %p1345_p4 = scmp.ne.s32.totalorder %s996_s16, %s1344_s5  ;;  %p1350_p6 = scmp.lt.s32.totalorder %s1344_s5, %s1344_s5 }
 0x43c   :  { %v956_v24 = vrot.slane %v955_v21, 1  ;;  %v963_v27 = vsel %vm796_vm2, %v950_v22, %v962_v26  ;;  %p1351_p7 = por %p1350_p6, %p1349_p5 }
 0x43e   :  { %v957_v25 = vadd.f32 %v956_v24, %v955_v21  ;;  %p1352_p8 = pnand %p1351_p7, %p1345_p4 }
 0x440   :  { %v964_v28 = vsel %vm798_vm3, %v957_v25, %v963_v27 }
 0x441   :  { %967 = vst.msk [vmem:[#allocation8] sm:$0xf] %vm966_vm5, %v964_v28 }
 0x442   :  { %1355 = shalt.err (!%p1352_p8)
}
 0x443   :  { %s1356_s19 = scalar_lea.hbm %s1620_s4, 64 }
 0x444   :  { %p1357_p9 = scmp.ne.s32.totalorder %s1620_s4, %s1356_s19  ;;  %p1360_p10 = scmp.lt.u32.totalorder %s1356_s19, %s1620_s4 }
 0x446   :  { %p1362_p11 = pnand %p1360_p10, %p1357_p9 }
 0x448   :  { %1365 = shalt.err (!%p1362_p11)
}
 0x449   :  { %998 = dma.vmem_to_hbm [thread:$0]  %s996_s16, 64, %s1620_s4, [#allocation4]  }
 0x44a   :  { %1370 = dma.done.wait [#allocation4], 64  }
 0x44b   :  { %1371 = vsyncadd [#allocation4], 4294967232 }
 0x44c   :  { %1372 = dma.done.wait [#allocation10], 64  }
 0x44d   :  { %1373 = vsyncadd [#allocation10], 4294967232 }
 0x44e   :  { %1015 = vsyncpa [#allocation3], 1 }
 0x44f   :  { %1016 = vsyncpa [#allocation6], 1 }
 0x450   :  { %1017 = vsyncpa [#allocation4], 1 }
 0x451   :  { %1018 = vsyncpa [#allocation10], 1 }

</bundles_post_ra>
